<compile_context>
chip_gen: v6e
topology: v6e:2x2x1
jax: 0.10.0
libtpu: 0.0.40
codegen_flags: <defaults>
</compile_context>

<pallas_src>
import jax
import jax.numpy as jnp
from jax import lax
from jax.experimental import pallas as pl
from jax.experimental.pallas import tpu as pltpu


def _downsample_kernel(wexp_ref, p_ref, x_ref, o_ref):
    """One (batch, output-row-tile) block.

    wexp_ref: (Cout*tHo, C*tHo) f32  1x1-conv weight kron'd with I_tHo
                                     (block-diagonal over the tHo row positions)
    p_ref:    (W, Wo) f32            horizontal 2-tap average matrix (carries 0.25)
    x_ref:    (1, C, tHo, 2*W)       input super-rows: [row 2*ho | row 2*ho+1]
    o_ref:    (1, Cout, tHo, Wo)     output tile, already in NCHW layout
    """
    _, C, tHo, W2 = x_ref.shape
    W = W2 // 2

    x = x_ref[...].astype(jnp.float32)                 # (1, C, tHo, 2W)
    # Vertical half of the 2x2 average: the two source rows are the two
    # contiguous halves of the 2W super-row -> plain (unstrided) lane slices.
    xv = x[0, :, :, :W] + x[0, :, :, W:]               # (C, tHo, W)  row-pair sum
    xv2 = xv.reshape(C * tHo, W)                       # leading merge (tHo % 8 == 0 -> layout no-op)
    # Horizontal half of the 2x2 average on the MXU (P holds the 0.25 weights).
    xh = jnp.dot(xv2, p_ref[...],
                 preferred_element_type=jnp.float32)   # (C*tHo, Wo)
    # 1x1 conv: channel contraction on the MXU via the row-expanded weight;
    # keeps everything a 2-D matmul + sublane-aligned leading reshapes.
    out = jnp.dot(wexp_ref[...], xh,
                  preferred_element_type=jnp.float32)  # (Cout*tHo, Wo)
    o_ref[...] = out.reshape(o_ref.shape).astype(o_ref.dtype)


def _pick_row_tile(Ho, C, W, Cout, itemsize=4):
    """Output-row tile: a multiple of 8 dividing Ho (keeps the in-kernel reshapes
    sublane-aligned and the output stores unmasked along sublanes), sized so the
    input block reaches ~512 KiB when possible while the expanded weight stays small."""
    if Ho % 8 != 0:
        # TODO(synk): tiny/odd Ho falls back to a single full-height tile.
        return Ho
    cands = [t for t in range(8, min(Ho, 64) + 1, 8) if Ho % t == 0]
    target_block_bytes = 512 * 1024
    wexp_cap_bytes = 6 * 1024 * 1024
    pick = cands[0]
    for t in cands:
        if (Cout * t) * (C * t) * itemsize > wexp_cap_bytes:
            break
        pick = t
        if C * t * 2 * W * itemsize >= target_block_bytes:
            break
    return pick


def downsample(x, conv_weight):
    """DownSample forward.

    x:           (N, Cin, H, W)     NCHW, even H and W
    conv_weight: (Cout, Cin, 1, 1)  1x1 conv weight, no bias (Cout = Cin + s_factor)
    returns      (N, Cout, H//2, W//2)
    """
    N, C, H, W = x.shape
    Cout = conv_weight.shape[0]
    assert conv_weight.shape == (Cout, C, 1, 1)
    # TODO(synk): odd H/W would need true bilinear tap weights; the module is used
    # with even spatial dims where bilinear(0.5, align_corners=False) == 2x2 avg.
    assert H % 2 == 0 and W % 2 == 0, "even spatial dims required"
    Ho, Wo = H // 2, W // 2

    tHo = _pick_row_tile(Ho, C, W, Cout)
    n_row_tiles = Ho // tHo

    # Free (no-copy) HBM view: x[n, c, 2*ho + d, w] == x4[n, c, ho, d*W + w].
    x4 = x.reshape(N, C, Ho, 2 * W)

    # Horizontal 2-tap average matrix, carries the whole 0.25 pooling factor:
    # P[2*j + d, j] = 0.25.
    p = jnp.kron(jnp.eye(Wo, dtype=jnp.float32),
                 jnp.full((2, 1), 0.25, dtype=jnp.float32))        # (W, Wo)

    # 1x1-conv weight expanded block-diagonally over the tHo row positions so the
    # channel contraction is a plain 2-D matmul on (C*tHo, Wo) tiles.
    w2 = conv_weight.reshape(Cout, C).astype(jnp.float32)
    wexp = jnp.kron(w2, jnp.eye(tHo, dtype=jnp.float32))           # (Cout*tHo, C*tHo)

    out = pl.pallas_call(
        _downsample_kernel,
        out_shape=jax.ShapeDtypeStruct((N, Cout, Ho, Wo), x.dtype),
        grid_spec=pltpu.PrefetchScalarGridSpec(
            num_scalar_prefetch=0,
            grid=(N, n_row_tiles),
            in_specs=[
                pl.BlockSpec((Cout * tHo, C * tHo), lambda n, t: (0, 0)),  # resident
                pl.BlockSpec((W, Wo), lambda n, t: (0, 0)),                # resident
                pl.BlockSpec((1, C, tHo, 2 * W), lambda n, t: (n, 0, t, 0)),
            ],
            out_specs=pl.BlockSpec((1, Cout, tHo, Wo), lambda n, t: (n, 0, t, 0)),
        ),
        compiler_params=pltpu.CompilerParams(
            dimension_semantics=("parallel", "parallel"),
            vmem_limit_bytes=32 * 1024 * 1024,
        ),
    )(wexp, p, x4)
    return out


def _reference(x, conv_weight):
    """Pure-JAX reference: 2x2 avg pool (== bilinear 0.5x, align_corners=False,
    even dims) followed by a 1x1 conv without bias."""
    pooled = lax.reduce_window(
        x, jnp.zeros((), x.dtype), lax.add,
        window_dimensions=(1, 1, 2, 2), window_strides=(1, 1, 2, 2),
        padding="VALID") * 0.25
    return lax.conv_general_dilated(
        pooled, conv_weight, window_strides=(1, 1), padding="VALID",
        dimension_numbers=("NCHW", "OIHW", "NCHW"))


if __name__ == "__main__":
    key = jax.random.PRNGKey(0)
    kx, kw = jax.random.split(key)

    N, C, H, W = 2, 4, 16, 16
    s_factor = 2
    Cout = C + s_factor

    x = jax.random.normal(kx, (N, C, H, W), dtype=jnp.float32)
    conv_weight = 0.1 * jax.random.normal(kw, (Cout, C, 1, 1), dtype=jnp.float32)

    y = downsample(x, conv_weight)
    jax.block_until_ready(y)

    y_ref = _reference(x, conv_weight)
    assert y.shape == (N, Cout, H // 2, W // 2)
    assert jnp.allclose(y, y_ref, atol=1e-5, rtol=1e-5), "mismatch vs reference"

    print("KERNEL_OK")
</pallas_src>

<mosaic_0001>
module attributes {stable_mosaic.version = 11 : i64} {
  func.func @_downsample_kernel(%arg0: i32, %arg1: i32, %arg2: memref<48x32xf32, #tpu.memory_space<vmem>>, %arg3: memref<16x8xf32, #tpu.memory_space<vmem>>, %arg4: memref<1x4x8x32xf32, #tpu.memory_space<vmem>>, %arg5: memref<1x6x8x8xf32, #tpu.memory_space<vmem>>) attributes {dimension_semantics = [#tpu.dimension_semantics<parallel>, #tpu.dimension_semantics<parallel>], iteration_bounds = array<i64: 2, 1>, scalar_prefetch = 0 : i64, scratch_operands = 0 : i64, tpu.core_type = #tpu.core_type<tc>, window_params = [{pipeline_mode = #tpu.pipeline_mode<synchronous>, transform_indices = @transform_0, window_bounds = array<i64: 48, 32>}, {pipeline_mode = #tpu.pipeline_mode<synchronous>, transform_indices = @transform_1, window_bounds = array<i64: 16, 8>}, {transform_indices = @transform_2, window_bounds = array<i64: 1, 4, 8, 32>}, {transform_indices = @transform_3, window_bounds = array<i64: 1, 6, 8, 8>}]} {
    %c0 = arith.constant 0 : index
    %c0_0 = arith.constant 0 : index
    %c0_1 = arith.constant 0 : index
    %c0_2 = arith.constant 0 : index
    %0 = vector.load %arg4[%c0, %c0_0, %c0_1, %c0_2] : memref<1x4x8x32xf32, #tpu.memory_space<vmem>>, vector<1x4x8x32xf32>
    %1 = vector.extract_strided_slice %0 {offsets = [0, 0, 0, 0], sizes = [1, 4, 8, 16], strides = [1, 1, 1, 1]} : vector<1x4x8x32xf32> to vector<1x4x8x16xf32>
    %2 = vector.shape_cast %1 : vector<1x4x8x16xf32> to vector<4x8x16xf32>
    %3 = vector.extract_strided_slice %0 {offsets = [0, 0, 0, 16], sizes = [1, 4, 8, 16], strides = [1, 1, 1, 1]} : vector<1x4x8x32xf32> to vector<1x4x8x16xf32>
    %4 = vector.shape_cast %3 : vector<1x4x8x16xf32> to vector<4x8x16xf32>
    %5 = arith.addf %2, %4 : vector<4x8x16xf32>
    %6 = vector.shape_cast %5 : vector<4x8x16xf32> to vector<32x16xf32>
    %c0_3 = arith.constant 0 : index
    %c0_4 = arith.constant 0 : index
    %7 = vector.load %arg3[%c0_3, %c0_4] : memref<16x8xf32, #tpu.memory_space<vmem>>, vector<16x8xf32>
    %cst = arith.constant dense<0.000000e+00> : vector<32x8xf32>
    %8 = tpu.matmul %6, %7, %cst {dimension_numbers = #tpu.dot_dimension_numbers<[1], [0], [0], [1], [0, 0, 1, 1], [], []>} : vector<32x16xf32>, vector<16x8xf32>, vector<32x8xf32> -> vector<32x8xf32>
    %c0_5 = arith.constant 0 : index
    %c0_6 = arith.constant 0 : index
    %9 = vector.load %arg2[%c0_5, %c0_6] : memref<48x32xf32, #tpu.memory_space<vmem>>, vector<48x32xf32>
    %cst_7 = arith.constant dense<0.000000e+00> : vector<48x8xf32>
    %10 = tpu.matmul %9, %8, %cst_7 {dimension_numbers = #tpu.dot_dimension_numbers<[1], [0], [0], [1], [0, 0, 1, 1], [], []>} : vector<48x32xf32>, vector<32x8xf32>, vector<48x8xf32> -> vector<48x8xf32>
    %11 = vector.shape_cast %10 : vector<48x8xf32> to vector<1x6x8x8xf32>
    %c0_8 = arith.constant 0 : index
    %c0_9 = arith.constant 0 : index
    %c0_10 = arith.constant 0 : index
    %c0_11 = arith.constant 0 : index
    %12 = vector.load %arg5[%c0_8, %c0_9, %c0_10, %c0_11] : memref<1x6x8x8xf32, #tpu.memory_space<vmem>>, vector<1x6x8x8xf32>
    tpu.vector_store %arg5[%c0_8, %c0_9, %c0_10, %c0_11], %11 {strides = array<i32>} : memref<1x6x8x8xf32, #tpu.memory_space<vmem>>, vector<1x6x8x8xf32>,
    return
  }
  func.func @transform_0(%arg0: i32, %arg1: i32) -> (i32, i32) {
    %c0_i32 = arith.constant 0 : i32
    %c0_i32_0 = arith.constant 0 : i32
    %c0_i32_1 = arith.constant 0 : i32
    return %c0_i32, %c0_i32_0 : i32, i32
  }
  func.func @transform_1(%arg0: i32, %arg1: i32) -> (i32, i32) {
    %c0_i32 = arith.constant 0 : i32
    %c0_i32_0 = arith.constant 0 : i32
    %c0_i32_1 = arith.constant 0 : i32
    return %c0_i32, %c0_i32_0 : i32, i32
  }
  func.func @transform_2(%arg0: i32, %arg1: i32) -> (i32, i32, i32, i32) {
    %c0_i32 = arith.constant 0 : i32
    %c0_i32_0 = arith.constant 0 : i32
    %c0_i32_1 = arith.constant 0 : i32
    return %arg0, %c0_i32, %arg1, %c0_i32_0 : i32, i32, i32, i32
  }
  func.func @transform_3(%arg0: i32, %arg1: i32) -> (i32, i32, i32, i32) {
    %c0_i32 = arith.constant 0 : i32
    %c0_i32_0 = arith.constant 0 : i32
    %c0_i32_1 = arith.constant 0 : i32
    return %arg0, %c0_i32, %arg1, %c0_i32_0 : i32, i32, i32, i32
  }
}

</mosaic_0001>

<bundles_post_ra>
// kernel: tpu_custom_call.1
= control target key start
LH: loop header
LB: loop body
LE: loop exit
PB: predicated region body
PF: predicated region fallthrough
CT: control target
= control target key end

     0   :  { %8 = vsyncpa [#allocation3], 0  ;;  %s922_s0 = inlined_call_operand.vmem [shape: f32[48,32], index: 0, kind: input, shape index: {}]   ;;  %s923_s1 = inlined_call_operand.vmem [shape: f32[16,8], index: 1, kind: input, shape index: {}]   ;;  %s924_s2 = inlined_call_operand.vmem [shape: f32[2,4,8,32], index: 2, kind: input, shape index: {}]   ;;  %s925_s3 = inlined_call_operand.hbm [shape: f32[2,6,8,8], index: 3, kind: output, shape index: {}]  }
   0x1   :  { %10 = vsyncpa [#allocation3 + $0x1], 0  ;;  %s772_s12 = smov 0   ;;  %s774_s13 = smov 0  }
   0x2   :  { %s776_s14 = smov 0   ;;  %s778_s15 = smov 0  }
   0x3   :  { %s780_s16 = smov 0   ;;  %s782_s17 = smov 0  }
   0x4 LB: > { %s538_s18 = sadd.s32 4294967295, %s746_s17   ;;  %s539_s19 = sadd.s32 4294967294, %s746_s17   ;;  %s746_s17 = sphi %s782_s17, %s16_s17   ;;  %s742_s16 = sphi %s780_s16, %s932_s16   ;;  %s738_s15 = sphi %s778_s15, %s931_s15   ;;  %s734_s14 = sphi %s776_s14, %s930_s14   ;;  %s730_s13 = sphi %s774_s13, %s929_s13   ;;  %s726_s12 = sphi %s772_s12, %s928_s12  }
   0x5   : > { %s28_s20 = sadd.s32 1, %s742_s16  ;;  %s107_s21 = sadd.s32 1, %s734_s14 }
   0x6   : > { %p30_p0 = scmp.ge.s32.totalorder %s28_s20, 2  ;;  %p117_p1 = scmp.ne.s32.totalorder %s734_s14, %s730_s13 }
   0x7   : > { %p118_p2 = scmp.eq.s32.totalorder %s538_s18, 1  ;;  %p123_p3 = scmp.ne.s32.totalorder %s730_s13, %s726_s12 }
   0x8   : > { %s934_s20 = smov (%p30_p0, %s28_s20), 0  ;;  %p124_p5 = scmp.eq.s32.totalorder %s539_s19, 1 }
   0x9   : > { %p812_p4 = por %p118_p2, %p117_p1  ;;  %s102_s23 = ssub.s32 %s742_s16, %s934_s20 }
   0xa   : > { %p542_p6 = scmp.ge.s32.totalorder %s746_s17, 1  ;;  %p105_p7 = scmp.eq.s32.totalorder %s102_s23, 0 }
   0xb   : > { %p819_p8 = por %p124_p5, %p123_p3  ;;  %p159_p9 = scmp.lt.s32.totalorder %s746_s17, 3 }
   0xc   : > { %s825_s25 = scalar_select %p105_p7, %s734_s14, %s107_s21  }
   0xd   : > { %p160_p10 = pnand %p542_p6, %p159_p9 }
   0xe   : > { %p186_p11 = scmp.lt.s32.totalorder (!%p160_p10), %s738_s15, 1  ;;  %s748_s8 = smov (!%p160_p10), 112  }
   0xf   : > { %163 = sbr.rel (%p160_p10) target bundleno = 564 (0x234), region = 32  ;;  %s749_s19 = smov (!%p160_p10), [#allocation2]  }
  0x10   : > { %s611_s6 = smul.u32 (!%p160_p10), 768, %s738_s15  ;;  %s674_s21 = sshll.u32 (!%p160_p10), %s749_s19, 4  ;;  %s675_s21 = int_to_ptr.vmem [resolvable:$false] %s674_s21 }
  0x11   : > { %s676_s23 = scalar_lea.vmem (!%p160_p10), %s675_s21, 1536 }
  0x12   : > { %s873_s10 = scalar_lea.hbm (!%p160_p10), %s925_s3, %s611_s6 }
  0x14   : > { %v219_v0 = vld [vmem:[%s923_s1 + $0x8] sm:$0xff]  ;;  %v218_v1 = vld [vmem:[%s923_s1] sm:$0xff]  ;;  %s187_s30 = scalar_select %p186_p11, %s738_s15, 1  ;;  %vm220_vm0 = vcmask 130048   ;;  %v320_v14 = vld [vmem:[%s922_s0 + $0x10] sm:$0xff]  ;;  %vm324_vm1 = vcmask 261120  }
  0x15   : > { %575 = vmatprep.subr.mxu0 %v219_v0  ;;  %596 = vmatprep.mubr.msk.f32.mxu1 %vm324_vm1, %v320_v14  ;;  %v318_v15 = vld [vmem:[%s922_s0] sm:$0xff]  ;;  %v321_v20 = vld [vmem:[%s922_s0 + $0x18] sm:$0xff]  ;;  %v319_v21 = vld [vmem:[%s922_s0 + $0x8] sm:$0xff]  ;;  %vm438_vm2 = vcmask 64512  }
  0x16   : > { %576 = vmatpush3.msra.mxu0 %v219_v0  ;;  %s558_s4 = sshll.u32 %s187_s30, 5  ;;  %v322_v22 = vld [vmem:[%s922_s0 + $0x20] sm:$0xff]  ;;  %v323_v23 = vld [vmem:[%s922_s0 + $0x28] sm:$0xff] }
  0x17   : > { %577 = vmatprep.subr.mxu0 %v218_v1  ;;  %s193_s7 = scalar_lea.vmem %s924_s2, %s558_s4  ;;  %s183_s4 = sand.u32 1, %s730_s13  }
  0x18   : > { %578 = vmatpush3.msra.mxu0 %v218_v1  ;;  %v194_v2 = vld [vmem:[%s193_s7] sm:$0xff]  ;;  %v196_v3 = vld [vmem:[%s193_s7 + $0x10] sm:$0xff]  ;;  %v195_v4 = vld [vmem:[%s193_s7 + $0x8] sm:$0xff]  ;;  %s610_s5 = smul.u32 48, %s183_s4  ;;  %s877_s11 = scalar_lea.sflag [#allocation3], %s183_s4 }
  0x19   : > { %202 = vrot.lane.b32.xlu0 %v194_v2, %s748_s8  ;;  %206 = vrot.lane.b32.xlu1 %v196_v3, %s748_s8  ;;  %v197_v5 = vld [vmem:[%s193_s7 + $0x18] sm:$0xff] }
  0x1a   : > { %s185_s7 = scalar_lea.vmem [#allocation2], %s610_s5 }
  0x1d   : > { %204 = vrot.lane.b32.xlu0 %v195_v4, %s748_s8  ;;  %208 = vrot.lane.b32.xlu1 %v197_v5, %s748_s8  ;;  %s460_s8 = sshll.u32 %s185_s7, 4  ;;  %s868_s8 = int_to_ptr.vmem [resolvable:$true] %s460_s8 }
  0x1e   : > { %s670_s18 = scalar_lea.vmem %s868_s8, 768  ;;  %p677_p1 = scmp.lt.s32.totalorder %s868_s8, %s675_s21 }
  0x1f   : > { %p671_p12 = scmp.ne.s32.totalorder %s868_s8, %s670_s18  ;;  %p678_p2 = scmp.lt.s32.totalorder %s676_s23, %s670_s18 }
  0x21   : > { %p672_p13 = pnand %p671_p12, %p812_p4  ;;  %p679_p3 = por %p678_p2, %p677_p1 }
  0x23   : > { %p673_p0 = pneg %p672_p13 }
  0x25   : > { %p680_p5 = pnand %p679_p3, %p673_p0 }
  0x8b   : > { %v203_v6 = vpop.permute.xlu0 %202  ;;  %v207_v7 = vpop.permute.xlu1 %206 }
  0x8c   : > { %v214_v8 = vadd.f32 %v203_v6, %v194_v2  ;;  %v216_v9 = vadd.f32 %v207_v7, %v196_v3 }
  0x8e   : > { %579 = vmatprep.mubr.msk.f32.mxu0 %vm220_vm0, %v214_v8 }
  0x8f   : > { %v205_v10 = vpop.permute.xlu0 %204  ;;  %v209_v11 = vpop.permute.xlu1 %208 }
  0x90   : > { %v215_v12 = vadd.f32 %v205_v10, %v195_v4  ;;  %v217_v13 = vadd.f32 %v209_v11, %v197_v5 }
  0x92   : > { %580 = vmatmul.mubr.msk.f32.vlgmr.msra.gmra.mxu0 %vm220_vm0, %v215_v12 }
  0x93   : > { %582 = vmatprep.mubr.msk.f32.mxu0 %vm220_vm0, %v216_v9 }
  0x96   : > { %583 = vmatmul.mubr.msk.f32.gmra.mxu0 %vm220_vm0, %v217_v13 }
  0x97   : > { %593 = vmatprep.mubr.msk.f32.mxu0 %vm324_vm1, %v318_v15 }
 0x152   : > { %v581_v16 = vpop.f32.mrf.mxu0 }
 0x154   : > { %v299_v17 = vpop.f32.mrf.mxu0 }
 0x156   : > { %v584_v18 = vpop.f32.mrf.mxu0 }
 0x157   : > { %585 = vmatprep.subr.mxu0 %v584_v18  ;;  %602 = vmatprep.subr.mxu1 %v584_v18 }
 0x158   : > { %v309_v19 = vpop.f32.mrf.mxu0  ;;  %586 = vmatpush3.msra.mxu0 %v584_v18  ;;  %606 = vmatpush3.msra.mxu1 %v584_v18 }
 0x159   : > { %587 = vmatprep.subr.mxu0 %v309_v19  ;;  %603 = vmatprep.subr.mxu1 %v309_v19 }
 0x15a   : > { %588 = vmatpush3.msra.mxu0 %v309_v19  ;;  %607 = vmatpush3.msra.mxu1 %v309_v19 }
 0x15b   : > { %589 = vmatprep.subr.mxu0 %v581_v16  ;;  %604 = vmatprep.subr.mxu1 %v581_v16 }
 0x15c   : > { %590 = vmatpush3.msra.mxu0 %v581_v16  ;;  %608 = vmatpush3.msra.mxu1 %v581_v16 }
 0x15d   : > { %591 = vmatprep.subr.mxu0 %v299_v17  ;;  %605 = vmatprep.subr.mxu1 %v299_v17 }
 0x15e   : > { %592 = vmatpush3.msra.mxu0 %v299_v17  ;;  %609 = vmatpush3.msra.mxu1 %v299_v17 }
 0x15f   : > { %597 = vmatmul.mubr.msk.f32.vlgmr.msra.gmra.mxu1 %vm324_vm1, %v321_v20  ;;  %594 = vmatmul.mubr.msk.f32.vlgmr.msra.gmra.mxu0 %vm324_vm1, %v319_v21 }
 0x160   : > { %599 = vmatprep.mubr.msk.f32.mxu1 %vm324_vm1, %v322_v22 }
 0x163   : > { %600 = vmatmul.mubr.msk.f32.gmra.mxu1 %vm324_vm1, %v323_v23 }
 0x21f   : > { %v598_v24 = vpop.f32.mrf.mxu1  ;;  %v595_v25 = vpop.f32.mrf.mxu0 }
 0x220   : > { %442 = vst.msk [vmem:[%s185_s7 + $0x18] sm:$0xff] %vm438_vm2, %v598_v24  ;;  %440 = vst.msk [vmem:[%s185_s7 + $0x8] sm:$0xff] %vm438_vm2, %v595_v25 }
 0x221   : > { %v419_v26 = vpop.f32.mrf.mxu1  ;;  %v409_v27 = vpop.f32.mrf.mxu0 }
 0x222   : > { %441 = vst.msk [vmem:[%s185_s7 + $0x10] sm:$0xff] %vm438_vm2, %v419_v26  ;;  %439 = vst.msk [vmem:[%s185_s7] sm:$0xff] %vm438_vm2, %v409_v27 }
 0x223   : > { %v601_v28 = vpop.f32.mrf.mxu1 }
 0x224   : > { %444 = vst.msk [vmem:[%s185_s7 + $0x28] sm:$0xff] %vm438_vm2, %v601_v28 }
 0x225   : > { %v429_v29 = vpop.f32.mrf.mxu1 }
 0x226   : > { %443 = vst.msk [vmem:[%s185_s7 + $0x20] sm:$0xff] %vm438_vm2, %v429_v29 }
 0x227   : > { %683 = shalt.err (!%p680_p5)
}
 0x228   : > { %s684_s26 = scalar_lea.hbm %s873_s10, 768  ;;  %s688_s29 = scalar_lea.hbm %s925_s3, 1536 }
 0x229   : > { %p685_p6 = scmp.ne.s32.totalorder %s873_s10, %s684_s26  ;;  %p689_p10 = scmp.lt.s32.totalorder %s873_s10, %s925_s3 }
 0x22a   : > { %p690_p11 = scmp.lt.s32.totalorder %s688_s29, %s684_s26 }
 0x22b   : > { %p686_p7 = pnand %p685_p6, %p812_p4 }
 0x22c   : > { %p691_p12 = por %p690_p11, %p689_p10 }
 0x22d   : > { %p687_p9 = pneg %p686_p7 }
 0x22f   : > { %p692_p13 = pnand %p691_p12, %p687_p9 }
 0x231   : > { %695 = shalt.err (!%p692_p13)
}
 0x232   : > { %s750_s5 = smov 128   ;;  %s751_s6 = smov 8  }
 0x233   : > { %612 = dma.vmem_to_hbm [thread:$0]  (%p812_p4), %s868_s8, 768, %s873_s10, %s877_s11, %s750_s5, %s750_s5, %s751_s6  }
 0x234 PF: > { %p618_p0 = scmp.ge.s32.totalorder %s746_s17, 2  ;;  %s475_s7 = sand.u32 1, %s726_s12  }
 0x235   : > { %s476_s15 = scalar_lea.sflag [#allocation3], %s475_s7 }
 0x236   : > { %p615_p1 = pnand %p618_p0, %p819_p8 }
 0x238   : > { %p616_p2 = pneg %p615_p1 }
 0x23a   : > { %721 = dma.done.wait (%p616_p2), %s476_s15, 768  }
 0x23b   : > { %723 = vsyncadd (%p616_p2), %s476_s15, 4294966528  ;;  %s16_s17 = sadd.s32 1, %s746_s17   ;;  %s928_s12 = smov %s730_s13 }
 0x23c   : > { %p13_p3 = scmp.ge.s32.totalorder %s16_s17, 4   ;;  %s929_s13 = smov %s734_s14 }
 0x23d   : > { %s930_s14 = smov %s825_s25  ;;  %s931_s15 = smov %s742_s16 }
 0x23e   : > { %s932_s16 = smov %s934_s20  ;;  %15 = sbr.rel (!%p13_p3) target bundleno = 4 (0x4), region = 67 }
 0x243   :  { %481 = vsyncpa [#allocation3], 1 }
 0x244   :  { %483 = vsyncpa [#allocation3 + $0x1], 1 }

</bundles_post_ra>
